<compile_context>
chip_gen: v7x
topology: tpu7x:2x2x1
jax: 0.10.0
libtpu: 0.0.40
codegen_flags: <defaults>
</compile_context>

<pallas_src>
import functools

import jax
import jax.numpy as jnp
from jax.experimental import pallas as pl
from jax.experimental.pallas import tpu as pltpu


def _round_up(n, m):
    return ((n + m - 1) // m) * m


def _series_decomp_kernel(x_ref, res_ref, mean_ref, xp_ref, *,
                          kernel_size, seq_len, base):
    """x_ref: (1, L, ct) native-layout block; xp_ref: (rows, ct) VMEM scratch."""
    pad = (kernel_size - 1) // 2
    L = seq_len

    x = x_ref[0]                                     # (L, ct), native dtype
    # Build the edge-replicated, padded series once in VMEM (no HBM pad).
    xp_ref[base:base + L, :] = x                     # sublane-aligned store
    if pad > 0:
        first = x_ref[0, 0:1, :]                     # (1, ct)
        last = x_ref[0, L - 1:L, :]                  # (1, ct)
        ct = first.shape[1]
        xp_ref[base - pad:base, :] = jnp.broadcast_to(first, (pad, ct))
        xp_ref[base + L:base + L + pad, :] = jnp.broadcast_to(last, (pad, ct))

    xf = x.astype(jnp.float32)
    acc = xf                                         # center tap, reused
    lo = base - pad
    # Unrolled taps: static shifted slices of the padded scratch (no concat /
    # relayout); per-tap f32 cast, no whole-tile upcast temporary.
    for i in range(kernel_size):
        if i == pad:
            continue
        acc = acc + xp_ref[lo + i:lo + i + L, :].astype(jnp.float32)

    mean = acc * jnp.float32(1.0 / kernel_size)
    mean_ref[0] = mean.astype(mean_ref.dtype)
    res_ref[0] = (xf - mean).astype(res_ref.dtype)


def _choose_channel_tile(B, C, L, scratch_rows, itemsize,
                         target_step_bytes, vmem_budget_bytes):
    """Pick a lane-axis tile of C: big enough to amortize per-step overhead,
    small enough for every generation's scoped VMEM (incl. double-buffering)."""

    def vmem_need(ct):
        io = 2 * 3 * L * ct * itemsize            # (in + 2 outs) double-buffered
        scratch = scratch_rows * ct * itemsize    # padded staging buffer
        work = 2 * L * ct * 4                     # f32 accumulator + tap in flight
        return io + scratch + work

    if C <= 128:
        return C, vmem_need(C)

    ct = int(target_step_bytes // (3 * L * itemsize)) // 128 * 128
    ct = max(128, min(ct, _round_up(C, 128)))
    while ct > 128 and vmem_need(ct) > vmem_budget_bytes:
        ct -= 128

    if ct >= C:
        ct = C
        if B == 1 and C >= 256:
            # Keep >= 2 grid steps so both v7x TensorCores get work.
            ct = _round_up(pl.cdiv(C, 2), 128)
    else:
        # Prefer a tile that divides C exactly (lane-dense last tile).
        for cand in range(ct, 127, -128):
            if C % cand == 0:
                if cand * 2 >= ct:
                    ct = cand
                break
    return ct, vmem_need(min(ct, C))


def series_decomp(x, kernel_size, *,
                  target_step_bytes=12 << 20,
                  vmem_budget_bytes=24 << 20):
    """x: (B, L, C) float array. Returns (res, moving_mean), each (B, L, C)."""
    if kernel_size < 1 or kernel_size % 2 == 0:
        # Even kernel_size changes AvgPool1d's output length/alignment and is
        # never used by PatchTST; refuse rather than silently mismatch.
        raise ValueError("series_decomp requires an odd kernel_size >= 1")

    B, L, C = x.shape
    pad = (kernel_size - 1) // 2
    itemsize = jnp.dtype(x.dtype).itemsize

    base = _round_up(pad, 8)                          # aligned offset for x rows
    scratch_rows = _round_up(base + L + pad, 8)

    ct, vmem_need = _choose_channel_tile(
        B, C, L, scratch_rows, itemsize, target_step_bytes, vmem_budget_bytes)
    grid = (B, pl.cdiv(C, ct))

    kernel = functools.partial(
        _series_decomp_kernel, kernel_size=kernel_size, seq_len=L, base=base)

    block_spec = pl.BlockSpec((1, L, ct), lambda b, j: (b, 0, j))
    out_shape = (
        jax.ShapeDtypeStruct((B, L, C), x.dtype),     # res
        jax.ShapeDtypeStruct((B, L, C), x.dtype),     # moving_mean
    )
    cost = pl.CostEstimate(
        flops=(kernel_size + 2) * B * L * C,
        transcendentals=0,
        bytes_accessed=3 * B * L * C * itemsize,
    )
    vmem_limit = int(min(max(vmem_need + vmem_need // 4, 32 << 20), 128 << 20))

    res, mean = pl.pallas_call(
        kernel,
        out_shape=out_shape,
        grid_spec=pltpu.PrefetchScalarGridSpec(
            num_scalar_prefetch=0,
            grid=grid,
            in_specs=[block_spec],
            out_specs=(block_spec, block_spec),
            scratch_shapes=[pltpu.VMEM((scratch_rows, ct), x.dtype)],
        ),
        compiler_params=pltpu.CompilerParams(
            dimension_semantics=("parallel", "parallel"),
            vmem_limit_bytes=vmem_limit,
        ),
        cost_estimate=cost,
    )(x)
    return res, mean


def _reference_series_decomp(x, kernel_size):
    """Pure-JAX reference mirroring the PyTorch module."""
    pad = (kernel_size - 1) // 2
    front = jnp.repeat(x[:, 0:1, :], pad, axis=1)
    end = jnp.repeat(x[:, -1:, :], pad, axis=1)
    xp = jnp.concatenate([front, x, end], axis=1)
    L = x.shape[1]
    windows = jnp.stack([xp[:, i:i + L, :] for i in range(kernel_size)], axis=0)
    mean = jnp.mean(windows, axis=0)
    return x - mean, mean


if __name__ == "__main__":
    def _check(B, L, C, K, key, **kw):
        x = jax.random.normal(jax.random.PRNGKey(key), (B, L, C),
                              dtype=jnp.float32)
        res, mean = series_decomp(x, K, **kw)
        jax.block_until_ready((res, mean))
        ref_res, ref_mean = _reference_series_decomp(x, K)
        assert res.shape == (B, L, C) and mean.shape == (B, L, C)
        assert jnp.allclose(mean, ref_mean, atol=1e-5, rtol=1e-5)
        assert jnp.allclose(res, ref_res, atol=1e-5, rtol=1e-5)

    # Case 1: small PatchTST-like shape; native layout, one channel tile.
    _check(2, 16, 8, 7, key=0)

    # Case 2: multi-tile channel axis with a ragged (masked) last lane tile.
    _check(3, 24, 200, 5, key=1, target_step_bytes=8 * 1024)

    # Case 3: production-ish K=25 (pad=12 -> aligned scratch base), lane-dense C.
    _check(2, 96, 256, 25, key=2)

    print("KERNEL_OK")
</pallas_src>

<mosaic_0001>
module attributes {stable_mosaic.version = 11 : i64} {
  func.func @_series_decomp_kernel(%arg0: i32, %arg1: i32, %arg2: memref<1x16x8xf32, #tpu.memory_space<vmem>>, %arg3: memref<1x16x8xf32, #tpu.memory_space<vmem>>, %arg4: memref<1x16x8xf32, #tpu.memory_space<vmem>>, %arg5: memref<32x8xf32, #tpu.memory_space<vmem>>) attributes {dimension_semantics = [#tpu.dimension_semantics<parallel>, #tpu.dimension_semantics<parallel>], iteration_bounds = array<i64: 2, 1>, scalar_prefetch = 0 : i64, scratch_operands = 1 : i64, tpu.core_type = #tpu.core_type<tc>, window_params = [{transform_indices = @transform_0, window_bounds = array<i64: 1, 16, 8>}, {transform_indices = @transform_1, window_bounds = array<i64: 1, 16, 8>}, {transform_indices = @transform_2, window_bounds = array<i64: 1, 16, 8>}]} {
    %c0 = arith.constant 0 : index
    %c0_0 = arith.constant 0 : index
    %c0_1 = arith.constant 0 : index
    %0 = vector.load %arg2[%c0, %c0_0, %c0_1] : memref<1x16x8xf32, #tpu.memory_space<vmem>>, vector<1x16x8xf32>
    %1 = vector.shape_cast %0 : vector<1x16x8xf32> to vector<16x8xf32>
    %c8 = arith.constant 8 : index
    %c0_2 = arith.constant 0 : index
    %2 = vector.load %arg5[%c8, %c0_2] : memref<32x8xf32, #tpu.memory_space<vmem>>, vector<16x8xf32>
    tpu.vector_store %arg5[%c8, %c0_2], %1 {strides = array<i32>} : memref<32x8xf32, #tpu.memory_space<vmem>>, vector<16x8xf32>,
    %c0_3 = arith.constant 0 : index
    %c0_4 = arith.constant 0 : index
    %c0_5 = arith.constant 0 : index
    %3 = vector.load %arg2[%c0_3, %c0_4, %c0_5] : memref<1x16x8xf32, #tpu.memory_space<vmem>>, vector<1x1x8xf32>
    %4 = vector.shape_cast %3 : vector<1x1x8xf32> to vector<1x8xf32>
    %c0_6 = arith.constant 0 : index
    %c15 = arith.constant 15 : index
    %c0_7 = arith.constant 0 : index
    %5 = vector.load %arg2[%c0_6, %c15, %c0_7] : memref<1x16x8xf32, #tpu.memory_space<vmem>>, vector<1x1x8xf32>
    %6 = vector.shape_cast %5 : vector<1x1x8xf32> to vector<1x8xf32>
    %7 = vector.shape_cast %4 : vector<1x8xf32> to vector<1x8xf32>
    %8 = vector.broadcast %7 : vector<1x8xf32> to vector<3x8xf32>
    %c5 = arith.constant 5 : index
    %c0_8 = arith.constant 0 : index
    %9 = vector.load %arg5[%c5, %c0_8] : memref<32x8xf32, #tpu.memory_space<vmem>>, vector<3x8xf32>
    tpu.vector_store %arg5[%c5, %c0_8], %8 {strides = array<i32>} : memref<32x8xf32, #tpu.memory_space<vmem>>, vector<3x8xf32>,
    %10 = vector.shape_cast %6 : vector<1x8xf32> to vector<1x8xf32>
    %11 = vector.broadcast %10 : vector<1x8xf32> to vector<3x8xf32>
    %c24 = arith.constant 24 : index
    %c0_9 = arith.constant 0 : index
    %12 = vector.load %arg5[%c24, %c0_9] : memref<32x8xf32, #tpu.memory_space<vmem>>, vector<3x8xf32>
    tpu.vector_store %arg5[%c24, %c0_9], %11 {strides = array<i32>} : memref<32x8xf32, #tpu.memory_space<vmem>>, vector<3x8xf32>,
    %c5_10 = arith.constant 5 : index
    %c0_11 = arith.constant 0 : index
    %13 = vector.load %arg5[%c5_10, %c0_11] : memref<32x8xf32, #tpu.memory_space<vmem>>, vector<16x8xf32>
    %14 = arith.addf %1, %13 : vector<16x8xf32>
    %c6 = arith.constant 6 : index
    %c0_12 = arith.constant 0 : index
    %15 = vector.load %arg5[%c6, %c0_12] : memref<32x8xf32, #tpu.memory_space<vmem>>, vector<16x8xf32>
    %16 = arith.addf %14, %15 : vector<16x8xf32>
    %c7 = arith.constant 7 : index
    %c0_13 = arith.constant 0 : index
    %17 = vector.load %arg5[%c7, %c0_13] : memref<32x8xf32, #tpu.memory_space<vmem>>, vector<16x8xf32>
    %18 = arith.addf %16, %17 : vector<16x8xf32>
    %c9 = arith.constant 9 : index
    %c0_14 = arith.constant 0 : index
    %19 = vector.load %arg5[%c9, %c0_14] : memref<32x8xf32, #tpu.memory_space<vmem>>, vector<16x8xf32>
    %20 = arith.addf %18, %19 : vector<16x8xf32>
    %c10 = arith.constant 10 : index
    %c0_15 = arith.constant 0 : index
    %21 = vector.load %arg5[%c10, %c0_15] : memref<32x8xf32, #tpu.memory_space<vmem>>, vector<16x8xf32>
    %22 = arith.addf %20, %21 : vector<16x8xf32>
    %c11 = arith.constant 11 : index
    %c0_16 = arith.constant 0 : index
    %23 = vector.load %arg5[%c11, %c0_16] : memref<32x8xf32, #tpu.memory_space<vmem>>, vector<16x8xf32>
    %24 = arith.addf %22, %23 : vector<16x8xf32>
    %cst = arith.constant 0.142857149 : f32
    %25 = vector.broadcast %cst : f32 to vector<16x8xf32>
    %26 = arith.mulf %24, %25 : vector<16x8xf32>
    %c0_17 = arith.constant 0 : index
    %c0_18 = arith.constant 0 : index
    %c0_19 = arith.constant 0 : index
    %27 = vector.load %arg4[%c0_17, %c0_18, %c0_19] : memref<1x16x8xf32, #tpu.memory_space<vmem>>, vector<1x16x8xf32>
    %28 = vector.shape_cast %27 : vector<1x16x8xf32> to vector<16x8xf32>
    %29 = vector.shape_cast %26 : vector<16x8xf32> to vector<1x16x8xf32>
    tpu.vector_store %arg4[%c0_17, %c0_18, %c0_19], %29 {strides = array<i32>} : memref<1x16x8xf32, #tpu.memory_space<vmem>>, vector<1x16x8xf32>,
    %30 = arith.subf %1, %26 : vector<16x8xf32>
    %c0_20 = arith.constant 0 : index
    %c0_21 = arith.constant 0 : index
    %c0_22 = arith.constant 0 : index
    %31 = vector.load %arg3[%c0_20, %c0_21, %c0_22] : memref<1x16x8xf32, #tpu.memory_space<vmem>>, vector<1x16x8xf32>
    %32 = vector.shape_cast %31 : vector<1x16x8xf32> to vector<16x8xf32>
    %33 = vector.shape_cast %30 : vector<16x8xf32> to vector<1x16x8xf32>
    tpu.vector_store %arg3[%c0_20, %c0_21, %c0_22], %33 {strides = array<i32>} : memref<1x16x8xf32, #tpu.memory_space<vmem>>, vector<1x16x8xf32>,
    return
  }
  func.func @transform_0(%arg0: i32, %arg1: i32) -> (i32, i32, i32) {
    %c0_i32 = arith.constant 0 : i32
    %c0_i32_0 = arith.constant 0 : i32
    return %arg0, %c0_i32, %arg1 : i32, i32, i32
  }
  func.func @transform_1(%arg0: i32, %arg1: i32) -> (i32, i32, i32) {
    %c0_i32 = arith.constant 0 : i32
    %c0_i32_0 = arith.constant 0 : i32
    return %arg0, %c0_i32, %arg1 : i32, i32, i32
  }
  func.func @transform_2(%arg0: i32, %arg1: i32) -> (i32, i32, i32) {
    %c0_i32 = arith.constant 0 : i32
    %c0_i32_0 = arith.constant 0 : i32
    return %arg0, %c0_i32, %arg1 : i32, i32, i32
  }
}

</mosaic_0001>

<bundles_post_ra>
// kernel: tpu_custom_call.1
= control target key start
LH: loop header
LB: loop body
LE: loop exit
PB: predicated region body
PF: predicated region fallthrough
CT: control target
= control target key end

     0   :  { %s457_s9 = smov 0   ;;  %s459_s10 = smov 0   ;;  %s504_s0 = inlined_call_operand.vmem [shape: f32[2,16,8], index: 0, kind: input, shape index: {}]   ;;  %s505_s1 = inlined_call_operand.vmem [shape: f32[2,16,8], index: 1, kind: output, shape index: {0}]   ;;  %s506_s2 = inlined_call_operand.vmem [shape: f32[2,16,8], index: 2, kind: output, shape index: {1}]  }
   0x1   :  { %s461_s11 = smov 0  }
   0x2 LB: > { %s25_s12 = sadd.s32 1, %s436_s10  ;;  %p380_p0 = scmp.ge.s32.totalorder %s440_s11, 1  ;;  %s440_s11 = sphi %s461_s11, %s13_s11   ;;  %s436_s10 = sphi %s459_s10, %s508_s10   ;;  %s432_s9 = sphi %s457_s9, %s507_s9  }
   0x3   : > { %p27_p1 = scmp.ge.s32.totalorder %s25_s12, 2  ;;  %p136_p2 = scmp.lt.s32.totalorder %s440_s11, 3 }
   0x5   : > { %s510_s12 = smov (%p27_p1, %s25_s12), 0  ;;  %p137_p3 = pnand %p380_p0, %p136_p2 }
   0x6   : > { %p172_p4 = scmp.lt.s32.totalorder (!%p137_p3), %s432_s9, 1  ;;  %vm198_vm0 = vcmask (!%p137_p3), 64512   ;;  %vm207_vm1 = vcmask (!%p137_p3), 59392  }
   0x7   : > { %140 = sbr.rel (%p137_p3) target bundleno = 44 (0x2c), region = 24 }
   0xe   : > { %s512_s9 = smov (!%p172_p4, %s432_s9), 1 }
   0xf   : > { %s475_s13 = sshll.u32 %s512_s9, 4 }
  0x10   : > { %s179_s16 = scalar_lea.vmem %s504_s0, %s475_s13  ;;  %s195_s19 = scalar_lea.vmem %s506_s2, %s475_s13 }
  0x11   : > { %v196_v0 = vld [vmem:[%s179_s16] sm:$0xff]  ;;  %v197_v1 = vld [vmem:[%s179_s16 + $0x8] sm:$0xff]  ;;  %s187_s22 = scalar_lea.vmem %s505_s1, %s475_s13 }
  0x12   : > { %v387_v2 = vld [vmem:[%s179_s16] ss:$0 sm:$0xff]  ;;  %199 = vst.msk [vmem:[#allocation2 + $0x8] sm:$0xff] %vm198_vm0, %v196_v0  ;;  %200 = vst.msk [vmem:[#allocation2 + $0x10] sm:$0xff] %vm198_vm0, %v197_v1  ;;  %v388_v3 = vld [vmem:[%s179_s16 + $0xf] ss:$0 sm:$0xff] }
  0x13   : > { %208 = vst.msk [vmem:[#allocation2 + $0x5] sm:$0x7] %vm207_vm1, %v387_v2  ;;  %213 = vst.msk [vmem:[#allocation2 + $0x18] sm:$0x7] %vm207_vm1, %v388_v3 }
  0x19   : > { %v215_v4 = vld [vmem:[#allocation2 + $0xd] sm:$0xff] }
  0x1a   : > { %v217_v5 = vadd.f32 %v215_v4, %v197_v1  ;;  %v214_v6 = vld [vmem:[#allocation2 + $0x5] sm:$0xff]  ;;  %v219_v7 = vld [vmem:[#allocation2 + $0xe] sm:$0xff] }
  0x1b   : > { %v216_v8 = vadd.f32 %v214_v6, %v196_v0  ;;  %v218_v10 = vld [vmem:[#allocation2 + $0x6] sm:$0xff]  ;;  %v223_v11 = vld [vmem:[#allocation2 + $0xf] sm:$0xff] }
  0x1c   : > { %v221_v9 = vadd.f32 %v219_v7, %v217_v5  ;;  %v222_v14 = vld [vmem:[#allocation2 + $0x7] sm:$0xff]  ;;  %v227_v16 = vld [vmem:[#allocation2 + $0x11] sm:$0xff] }
  0x1d   : > { %v220_v12 = vadd.f32 %v218_v10, %v216_v8  ;;  %v226_v17 = vld [vmem:[#allocation2 + $0x9] sm:$0xff]  ;;  %v231_v20 = vld [vmem:[#allocation2 + $0x12] sm:$0xff] }
  0x1e   : > { %v225_v13 = vadd.f32 %v223_v11, %v221_v9  ;;  %v230_v21 = vld [vmem:[#allocation2 + $0xa] sm:$0xff]  ;;  %v235_v24 = vld [vmem:[#allocation2 + $0x13] sm:$0xff] }
  0x1f   : > { %v224_v15 = vadd.f32 %v222_v14, %v220_v12  ;;  %v234_v25 = vld [vmem:[#allocation2 + $0xb] sm:$0xff] }
  0x20   : > { %v229_v18 = vadd.f32 %v227_v16, %v225_v13 }
  0x21   : > { %v228_v19 = vadd.f32 %v226_v17, %v224_v15 }
  0x22   : > { %v233_v22 = vadd.f32 %v231_v20, %v229_v18 }
  0x23   : > { %v232_v23 = vadd.f32 %v230_v21, %v228_v19 }
  0x24   : > { %v237_v26 = vadd.f32 %v235_v24, %v233_v22 }
  0x25   : > { %v236_v27 = vadd.f32 %v234_v25, %v232_v23 }
  0x26   : > { %v239_v28 = vmul.f32 0.14285715, %v237_v26 }
  0x27   : > { %v238_v29 = vmul.f32 0.14285715, %v236_v27 }
  0x28   : > { %241 = vst.msk [vmem:[%s195_s19 + $0x8] sm:$0xff] %vm198_vm0, %v239_v28  ;;  %v243_v30 = vsub.f32 %v197_v1, %v239_v28 }
  0x29   : > { %240 = vst.msk [vmem:[%s195_s19] sm:$0xff] %vm198_vm0, %v238_v29  ;;  %v242_v31 = vsub.f32 %v196_v0, %v238_v29 }
  0x2a   : > { %245 = vst.msk [vmem:[%s187_s22 + $0x8] sm:$0xff] %vm198_vm0, %v243_v30 }
  0x2b   : > { %244 = vst.msk [vmem:[%s187_s22] sm:$0xff] %vm198_vm0, %v242_v31 }
  0x2c PF: > { %s13_s11 = sadd.s32 1, %s440_s11   ;;  %s507_s9 = smov %s436_s10 }
  0x2d   : > { %p10_p5 = scmp.ge.s32.totalorder %s13_s11, 4   ;;  %s508_s10 = smov %s510_s12 }
  0x2f   :  { %12 = sbr.rel (!%p10_p5) target bundleno = 2 (0x2), region = 66 }

</bundles_post_ra>
